<compile_context>
chip_gen: v7x
topology: tpu7x:2x2x1
jax: 0.10.0
libtpu: 0.0.40
codegen_flags: <defaults>
</compile_context>

<pallas_src>
import functools
import math

import jax
import jax.numpy as jnp
from jax.experimental import pallas as pl
from jax.experimental.pallas import tpu as pltpu


# --------------------------------------------------------------------------
# helpers
# --------------------------------------------------------------------------

def _round_up(a, b):
    return (a + b - 1) // b * b


def _pick_tile(n, candidates=(512, 256, 128)):
    """Largest candidate that divides n, else the full extent."""
    for c in candidates:
        if n >= c and n % c == 0:
            return c
    return n


# --------------------------------------------------------------------------
# Pallas kernels
# --------------------------------------------------------------------------

def _attn_block_kernel(x_ref, ctx_ref, wq_ref, bq_ref, wkv_ref, bkv_ref,
                       wo_ref, bo_ref, g_ref, b_ref, o_ref, *,
                       num_heads, causal, scale, tq):
    """Fused: Q/KV proj -> batched multi-head attention -> out-proj -> +residual -> LayerNorm.

    Grid: (batch, Sq tile).  Blocks:
      x_ref   (1, tq, D)   query rows + residual input
      ctx_ref (1, Sk, D)   key/value source (== x for self-attention)
      wq (D, D)  bq (1, D) ; wkv (D, 2D)  bkv (1, 2D)   (K and V fused)
      wo (D, D)  bo (1, D) ; g/b (1, D)   LayerNorm affine
      o_ref   (1, tq, D)
    """
    x = x_ref[0]                         # (tq, D)  native dtype (bf16-friendly)
    ctx = ctx_ref[0]                     # (Sk, D)
    Tq, D = x.shape
    Sk = ctx.shape[0]
    H = num_heads
    Dh = D // H
    cdt = x.dtype                        # compute dtype for MXU inputs

    # Projections: accumulate in f32 but keep MXU inputs in the native dtype.
    q = jnp.dot(x, wq_ref[...], preferred_element_type=jnp.float32) + bq_ref[...]       # (tq, D)
    kv = jnp.dot(ctx, wkv_ref[...], preferred_element_type=jnp.float32) + bkv_ref[...]  # (Sk, 2D)
    k = kv[:, :D]
    v = kv[:, D:]

    # Head split via reshape; one batched contraction over all heads (no per-head
    # Python loop, no explicit K transpose, no concatenate).
    q3 = q.reshape(Tq, H, Dh).astype(cdt)
    k3 = k.reshape(Sk, H, Dh).astype(cdt)
    v3 = v.reshape(Sk, H, Dh).astype(cdt)

    s = jnp.einsum('qhd,khd->hqk', q3, k3,
                   preferred_element_type=jnp.float32) * scale                          # (H, tq, Sk)

    if causal:
        row = jax.lax.broadcasted_iota(jnp.int32, (Tq, Sk), 0) + pl.program_id(1) * tq
        col = jax.lax.broadcasted_iota(jnp.int32, (Tq, Sk), 1)
        s = jnp.where((row >= col)[None, :, :], s, -1e30)

    # Softmax statistics in f32; normalization via EUP reciprocal.
    m = jnp.max(s, axis=-1, keepdims=True)
    p = jnp.exp(s - m)
    l = jnp.sum(p, axis=-1, keepdims=True)
    p = p * pl.reciprocal(l, approx=True)

    attn = jnp.einsum('hqk,khd->qhd', p.astype(cdt), v3,
                      preferred_element_type=jnp.float32).reshape(Tq, D)                # (tq, D)

    # Output projection + residual + LayerNorm (eps = 1e-5, PyTorch default).
    o = jnp.dot(attn.astype(cdt), wo_ref[...],
                preferred_element_type=jnp.float32) + bo_ref[...]
    z = x.astype(jnp.float32) + o
    mu = jnp.mean(z, axis=-1, keepdims=True)
    var = jnp.mean((z - mu) ** 2, axis=-1, keepdims=True)
    zn = (z - mu) * jax.lax.rsqrt(var + 1e-5)
    o_ref[0] = (zn * g_ref[...] + b_ref[...]).astype(o_ref.dtype)


def _ffn_block_kernel(x_ref, w1_ref, b1_ref, w2_ref, b2_ref, g_ref, bb_ref,
                      o_ref, acc_ref):
    """Fused FFN: Linear -> ReLU -> Linear (+residual +LayerNorm), F tiled as a reduction axis.

    Grid: (row tile i [parallel], F tile f [arbitrary]).  Blocks:
      x (tm, D) ; w1 (D, tf) ; b1 (1, tf) ; w2 (tf, D) ; b2/g/b (1, D) ; out (tm, D)
      acc_ref: (tm, D) f32 VMEM accumulator over the F tiles.
    """
    f = pl.program_id(1)

    @pl.when(f == 0)
    def _():
        acc_ref[...] = jnp.zeros_like(acc_ref)

    x = x_ref[...]                                                                       # (tm, D)
    cdt = x.dtype
    h = jnp.dot(x, w1_ref[...], preferred_element_type=jnp.float32) + b1_ref[...]        # (tm, tf)
    h = jnp.maximum(h, 0.0).astype(cdt)
    acc_ref[...] += jnp.dot(h, w2_ref[...], preferred_element_type=jnp.float32)          # (tm, D)

    @pl.when(f == pl.num_programs(1) - 1)
    def _():
        z = x.astype(jnp.float32) + acc_ref[...] + b2_ref[...]
        mu = jnp.mean(z, axis=-1, keepdims=True)
        var = jnp.mean((z - mu) ** 2, axis=-1, keepdims=True)
        zn = (z - mu) * jax.lax.rsqrt(var + 1e-5)
        o_ref[...] = (zn * g_ref[...] + bb_ref[...]).astype(o_ref.dtype)


# --------------------------------------------------------------------------
# Wrappers
# --------------------------------------------------------------------------

_VMEM_LIMIT = 64 * 1024 * 1024


def attention_add_norm(x, context, p, ln_g, ln_b, num_heads, causal):
    """LayerNorm(x + MultiheadAttention(x, context)) in one pallas_call, grid = (B, Sq tiles)."""
    B, Sq, D = x.shape
    Sk = context.shape[1]
    scale = 1.0 / math.sqrt(D // num_heads)
    tq = _pick_tile(Sq, (256, 128))

    kernel = functools.partial(_attn_block_kernel, num_heads=num_heads,
                               causal=causal, scale=scale, tq=tq)
    return pl.pallas_call(
        kernel,
        out_shape=jax.ShapeDtypeStruct((B, Sq, D), x.dtype),
        grid=(B, Sq // tq),
        in_specs=[
            pl.BlockSpec((1, tq, D), lambda b, i: (b, i, 0)),    # x / residual
            pl.BlockSpec((1, Sk, D), lambda b, i: (b, 0, 0)),    # context
            pl.BlockSpec((D, D), lambda b, i: (0, 0)),           # wq
            pl.BlockSpec((1, D), lambda b, i: (0, 0)),           # bq
            pl.BlockSpec((D, 2 * D), lambda b, i: (0, 0)),       # wkv (K|V fused)
            pl.BlockSpec((1, 2 * D), lambda b, i: (0, 0)),       # bkv
            pl.BlockSpec((D, D), lambda b, i: (0, 0)),           # wo
            pl.BlockSpec((1, D), lambda b, i: (0, 0)),           # bo
            pl.BlockSpec((1, D), lambda b, i: (0, 0)),           # gamma
            pl.BlockSpec((1, D), lambda b, i: (0, 0)),           # beta
        ],
        out_specs=pl.BlockSpec((1, tq, D), lambda b, i: (b, i, 0)),
        compiler_params=pltpu.CompilerParams(
            dimension_semantics=("parallel", "parallel"),
            vmem_limit_bytes=_VMEM_LIMIT),
    )(x, context, p["wq"], p["bq"], p["wkv"], p["bkv"], p["wo"], p["bo"], ln_g, ln_b)


def ffn_add_norm(x, p, ln_g, ln_b):
    """LayerNorm(x + FFN(x)); grid = (row tiles of B*S [parallel], F tiles [reduction])."""
    B, S, D = x.shape
    F = p["w1"].shape[1]
    M = B * S

    tm = min(256, _round_up(M, 8))        # large row tile; multiple of 8
    Mp = _round_up(M, tm)
    tf = _pick_tile(F)                    # F reduction tile bounds weight VMEM

    x2d = x.reshape(M, D)
    if Mp != M:
        x2d = jnp.pad(x2d, ((0, Mp - M), (0, 0)))

    out = pl.pallas_call(
        _ffn_block_kernel,
        out_shape=jax.ShapeDtypeStruct((Mp, D), x.dtype),
        grid=(Mp // tm, F // tf),
        in_specs=[
            pl.BlockSpec((tm, D), lambda i, f: (i, 0)),          # x / residual
            pl.BlockSpec((D, tf), lambda i, f: (0, f)),          # w1 (F-tiled)
            pl.BlockSpec((1, tf), lambda i, f: (0, f)),          # b1
            pl.BlockSpec((tf, D), lambda i, f: (f, 0)),          # w2 (F-tiled)
            pl.BlockSpec((1, D), lambda i, f: (0, 0)),           # b2
            pl.BlockSpec((1, D), lambda i, f: (0, 0)),           # gamma
            pl.BlockSpec((1, D), lambda i, f: (0, 0)),           # beta
        ],
        out_specs=pl.BlockSpec((tm, D), lambda i, f: (i, 0)),
        scratch_shapes=[pltpu.VMEM((tm, D), jnp.float32)],
        compiler_params=pltpu.CompilerParams(
            dimension_semantics=("parallel", "arbitrary"),
            vmem_limit_bytes=_VMEM_LIMIT),
    )(x2d, p["w1"], p["b1"], p["w2"], p["b2"], ln_g, ln_b)
    return out[:M].reshape(B, S, D)


def decoder_block(x, encoder_output, params, num_heads):
    # self-attention (causal tgt mask) + AddNorm  -- one kernel
    x = attention_add_norm(x, x, params["self_attn"],
                           params["ln1_g"], params["ln1_b"], num_heads, causal=True)
    # cross-attention (no memory mask) + AddNorm  -- one kernel
    x = attention_add_norm(x, encoder_output, params["cross_attn"],
                           params["ln2_g"], params["ln2_b"], num_heads, causal=False)
    # feed-forward + AddNorm                      -- one kernel
    x = ffn_add_norm(x, params["ffn"], params["ln3_g"], params["ln3_b"])
    return x


# --------------------------------------------------------------------------
# Deterministic parameter construction
# --------------------------------------------------------------------------

def make_params(key, embed_dim, ff_dim):
    D = embed_dim
    keys = jax.random.split(key, 10)

    def w(k, shape):
        return jax.random.normal(k, shape, jnp.float32) * 0.02

    def attn_params(ks):
        return {
            "wq": w(ks[0], (D, D)),
            "bq": jnp.zeros((1, D), jnp.float32),
            # K and V projection weights fused into one (D, 2D) matrix.
            "wkv": jnp.concatenate([w(ks[1], (D, D)), w(ks[2], (D, D))], axis=1),
            "bkv": jnp.zeros((1, 2 * D), jnp.float32),
            "wo": w(ks[3], (D, D)),
            "bo": jnp.zeros((1, D), jnp.float32),
        }

    return {
        "self_attn": attn_params(keys[0:4]),
        "cross_attn": attn_params(keys[4:8]),
        "ffn": {
            "w1": w(keys[8], (D, ff_dim)), "b1": jnp.zeros((1, ff_dim), jnp.float32),
            "w2": w(keys[9], (ff_dim, D)), "b2": jnp.zeros((1, D), jnp.float32),
        },
        "ln1_g": jnp.ones((1, D), jnp.float32), "ln1_b": jnp.zeros((1, D), jnp.float32),
        "ln2_g": jnp.ones((1, D), jnp.float32), "ln2_b": jnp.zeros((1, D), jnp.float32),
        "ln3_g": jnp.ones((1, D), jnp.float32), "ln3_b": jnp.zeros((1, D), jnp.float32),
    }


# --------------------------------------------------------------------------
# Main
# --------------------------------------------------------------------------

if __name__ == "__main__":
    B, Sq, Sk = 2, 8, 8
    embed_dim, num_heads, ff_dim = 32, 4, 64

    key = jax.random.PRNGKey(0)
    kx, kenc, kp = jax.random.split(key, 3)

    x = jax.random.normal(kx, (B, Sq, embed_dim), jnp.float32)
    encoder_output = jax.random.normal(kenc, (B, Sk, embed_dim), jnp.float32)
    params = make_params(kp, embed_dim, ff_dim)

    out = decoder_block(x, encoder_output, params, num_heads)
    out = jax.block_until_ready(out)
    assert out.shape == (B, Sq, embed_dim)
    assert bool(jnp.all(jnp.isfinite(out)))
    print("KERNEL_OK")
</pallas_src>

<mosaic_0001>
module attributes {stable_mosaic.version = 11 : i64} {
  func.func @_attn_block_kernel(%arg0: i32, %arg1: i32, %arg2: memref<1x8x32xf32, #tpu.memory_space<vmem>>, %arg3: memref<1x8x32xf32, #tpu.memory_space<vmem>>, %arg4: memref<32x32xf32, #tpu.memory_space<vmem>>, %arg5: memref<1x32xf32, #tpu.memory_space<vmem>>, %arg6: memref<32x64xf32, #tpu.memory_space<vmem>>, %arg7: memref<1x64xf32, #tpu.memory_space<vmem>>, %arg8: memref<32x32xf32, #tpu.memory_space<vmem>>, %arg9: memref<1x32xf32, #tpu.memory_space<vmem>>, %arg10: memref<1x32xf32, #tpu.memory_space<vmem>>, %arg11: memref<1x32xf32, #tpu.memory_space<vmem>>, %arg12: memref<1x8x32xf32, #tpu.memory_space<vmem>>) attributes {dimension_semantics = [#tpu.dimension_semantics<parallel>, #tpu.dimension_semantics<parallel>], iteration_bounds = array<i64: 2, 1>, scalar_prefetch = 0 : i64, scratch_operands = 0 : i64, tpu.core_type = #tpu.core_type<tc>, window_params = [{transform_indices = @transform_0, window_bounds = array<i64: 1, 8, 32>}, {transform_indices = @transform_1, window_bounds = array<i64: 1, 8, 32>}, {pipeline_mode = #tpu.pipeline_mode<synchronous>, transform_indices = @transform_2, window_bounds = array<i64: 32, 32>}, {pipeline_mode = #tpu.pipeline_mode<synchronous>, transform_indices = @transform_3, window_bounds = array<i64: 1, 32>}, {pipeline_mode = #tpu.pipeline_mode<synchronous>, transform_indices = @transform_4, window_bounds = array<i64: 32, 64>}, {pipeline_mode = #tpu.pipeline_mode<synchronous>, transform_indices = @transform_5, window_bounds = array<i64: 1, 64>}, {pipeline_mode = #tpu.pipeline_mode<synchronous>, transform_indices = @transform_6, window_bounds = array<i64: 32, 32>}, {pipeline_mode = #tpu.pipeline_mode<synchronous>, transform_indices = @transform_7, window_bounds = array<i64: 1, 32>}, {pipeline_mode = #tpu.pipeline_mode<synchronous>, transform_indices = @transform_8, window_bounds = array<i64: 1, 32>}, {pipeline_mode = #tpu.pipeline_mode<synchronous>, transform_indices = @transform_9, window_bounds = array<i64: 1, 32>}, {transform_indices = @transform_10, window_bounds = array<i64: 1, 8, 32>}]} {
    %c0 = arith.constant 0 : index
    %c0_0 = arith.constant 0 : index
    %c0_1 = arith.constant 0 : index
    %0 = vector.load %arg2[%c0, %c0_0, %c0_1] : memref<1x8x32xf32, #tpu.memory_space<vmem>>, vector<1x8x32xf32>
    %1 = vector.shape_cast %0 : vector<1x8x32xf32> to vector<8x32xf32>
    %c0_2 = arith.constant 0 : index
    %c0_3 = arith.constant 0 : index
    %c0_4 = arith.constant 0 : index
    %2 = vector.load %arg3[%c0_2, %c0_3, %c0_4] : memref<1x8x32xf32, #tpu.memory_space<vmem>>, vector<1x8x32xf32>
    %3 = vector.shape_cast %2 : vector<1x8x32xf32> to vector<8x32xf32>
    %c0_5 = arith.constant 0 : index
    %c0_6 = arith.constant 0 : index
    %4 = vector.load %arg4[%c0_5, %c0_6] : memref<32x32xf32, #tpu.memory_space<vmem>>, vector<32x32xf32>
    %cst = arith.constant dense<0.000000e+00> : vector<8x32xf32>
    %5 = tpu.matmul %1, %4, %cst {dimension_numbers = #tpu.dot_dimension_numbers<[1], [0], [0], [1], [0, 0, 1, 1], [], []>} : vector<8x32xf32>, vector<32x32xf32>, vector<8x32xf32> -> vector<8x32xf32>
    %c0_7 = arith.constant 0 : index
    %c0_8 = arith.constant 0 : index
    %6 = vector.load %arg5[%c0_7, %c0_8] : memref<1x32xf32, #tpu.memory_space<vmem>>, vector<1x32xf32>
    %7 = vector.broadcast %6 : vector<1x32xf32> to vector<8x32xf32>
    %8 = arith.addf %5, %7 : vector<8x32xf32>
    %c0_9 = arith.constant 0 : index
    %c0_10 = arith.constant 0 : index
    %9 = vector.load %arg6[%c0_9, %c0_10] : memref<32x64xf32, #tpu.memory_space<vmem>>, vector<32x64xf32>
    %cst_11 = arith.constant dense<0.000000e+00> : vector<8x64xf32>
    %10 = tpu.matmul %3, %9, %cst_11 {dimension_numbers = #tpu.dot_dimension_numbers<[1], [0], [0], [1], [0, 0, 1, 1], [], []>} : vector<8x32xf32>, vector<32x64xf32>, vector<8x64xf32> -> vector<8x64xf32>
    %c0_12 = arith.constant 0 : index
    %c0_13 = arith.constant 0 : index
    %11 = vector.load %arg7[%c0_12, %c0_13] : memref<1x64xf32, #tpu.memory_space<vmem>>, vector<1x64xf32>
    %12 = vector.broadcast %11 : vector<1x64xf32> to vector<8x64xf32>
    %13 = arith.addf %10, %12 : vector<8x64xf32>
    %14 = vector.extract_strided_slice %13 {offsets = [0, 0], sizes = [8, 32], strides = [1, 1]} : vector<8x64xf32> to vector<8x32xf32>
    %15 = vector.extract_strided_slice %13 {offsets = [0, 32], sizes = [8, 32], strides = [1, 1]} : vector<8x64xf32> to vector<8x32xf32>
    %16 = vector.shape_cast %8 : vector<8x32xf32> to vector<8x4x8xf32>
    %17 = vector.shape_cast %14 : vector<8x32xf32> to vector<8x4x8xf32>
    %18 = vector.shape_cast %15 : vector<8x32xf32> to vector<8x4x8xf32>
    "tpu.trace_start"() <{level = 10 : i32, message = "qhd,khd->hqk"}> : () -> ()
    %cst_14 = arith.constant dense<0.000000e+00> : vector<4x8x8xf32>
    %19 = tpu.matmul %16, %17, %cst_14 {dimension_numbers = #tpu.dot_dimension_numbers<[2], [2], [0], [0], [0, 1, 0, 0, 1, 0], [1], [1]>} : vector<8x4x8xf32>, vector<8x4x8xf32>, vector<4x8x8xf32> -> vector<4x8x8xf32>
    "tpu.trace_stop"() : () -> ()
    %cst_15 = arith.constant 0.353553385 : f32
    %20 = vector.broadcast %cst_15 : f32 to vector<4x8x8xf32>
    %21 = arith.mulf %19, %20 : vector<4x8x8xf32>
    %22 = tpu.iota {dimensions = array<i32: 0>} : vector<8x8xi32>
    %c8_i32 = arith.constant 8 : i32
    %23 = arith.muli %arg1, %c8_i32 : i32
    %24 = vector.broadcast %23 : i32 to vector<8x8xi32>
    %25 = arith.addi %22, %24 : vector<8x8xi32>
    %26 = tpu.iota {dimensions = array<i32: 1>} : vector<8x8xi32>
    %27 = arith.cmpi sge, %25, %26 : vector<8x8xi32>
    %28 = vector.shape_cast %27 : vector<8x8xi1> to vector<1x8x8xi1>
    %cst_16 = arith.constant -1.000000e+30 : f32
    %29 = vector.shape_cast %28 : vector<1x8x8xi1> to vector<1x8x8xi1>
    %30 = vector.broadcast %29 : vector<1x8x8xi1> to vector<4x8x8xi1>
    %31 = vector.broadcast %cst_16 : f32 to vector<4x8x8xf32>
    %32 = arith.select %30, %21, %31 : vector<4x8x8xi1>, vector<4x8x8xf32>
    %cst_17 = arith.constant dense<0xFF800000> : vector<4x8xf32>
    %33 = vector.multi_reduction <maximumf>, %32, %cst_17 [2] : vector<4x8x8xf32> to vector<4x8xf32>
    %34 = vector.shape_cast %33 : vector<4x8xf32> to vector<4x8x1xf32>
    %35 = vector.broadcast %34 : vector<4x8x1xf32> to vector<4x8x8xf32>
    %36 = arith.subf %32, %35 : vector<4x8x8xf32>
    %37 = math.exp %36 : vector<4x8x8xf32>
    %cst_18 = arith.constant dense<0.000000e+00> : vector<4x8xf32>
    %38 = vector.multi_reduction <add>, %37, %cst_18 [2] : vector<4x8x8xf32> to vector<4x8xf32>
    %39 = vector.shape_cast %38 : vector<4x8xf32> to vector<4x8x1xf32>
    %40 = tpu.reciprocal %39 {approx = true} : vector<4x8x1xf32> -> vector<4x8x1xf32>
    %41 = vector.broadcast %40 : vector<4x8x1xf32> to vector<4x8x8xf32>
    %42 = arith.mulf %37, %41 : vector<4x8x8xf32>
    "tpu.trace_start"() <{level = 10 : i32, message = "hqk,khd->qhd"}> : () -> ()
    %cst_19 = arith.constant dense<0.000000e+00> : vector<4x8x8xf32>
    %43 = tpu.matmul %18, %42, %cst_19 {dimension_numbers = #tpu.dot_dimension_numbers<[0], [2], [2], [1], [0, 1, 0, 2, 1, 1], [1], [0]>} : vector<8x4x8xf32>, vector<4x8x8xf32>, vector<4x8x8xf32> -> vector<4x8x8xf32>
    %44 = tpu.transpose %43, [2, 0, 1] : vector<4x8x8xf32> -> vector<8x4x8xf32>
    "tpu.trace_stop"() : () -> ()
    %45 = vector.shape_cast %44 : vector<8x4x8xf32> to vector<8x32xf32>
    %c0_20 = arith.constant 0 : index
    %c0_21 = arith.constant 0 : index
    %46 = vector.load %arg8[%c0_20, %c0_21] : memref<32x32xf32, #tpu.memory_space<vmem>>, vector<32x32xf32>
    %cst_22 = arith.constant dense<0.000000e+00> : vector<8x32xf32>
    %47 = tpu.matmul %45, %46, %cst_22 {dimension_numbers = #tpu.dot_dimension_numbers<[1], [0], [0], [1], [0, 0, 1, 1], [], []>} : vector<8x32xf32>, vector<32x32xf32>, vector<8x32xf32> -> vector<8x32xf32>
    %c0_23 = arith.constant 0 : index
    %c0_24 = arith.constant 0 : index
    %48 = vector.load %arg9[%c0_23, %c0_24] : memref<1x32xf32, #tpu.memory_space<vmem>>, vector<1x32xf32>
    %49 = vector.broadcast %48 : vector<1x32xf32> to vector<8x32xf32>
    %50 = arith.addf %47, %49 : vector<8x32xf32>
    %51 = arith.addf %1, %50 : vector<8x32xf32>
    %cst_25 = arith.constant dense<0.000000e+00> : vector<8xf32>
    %52 = vector.multi_reduction <add>, %51, %cst_25 [1] : vector<8x32xf32> to vector<8xf32>
    %53 = vector.shape_cast %52 : vector<8xf32> to vector<8x1xf32>
    %cst_26 = arith.constant 3.200000e+01 : f32
    %54 = vector.broadcast %cst_26 : f32 to vector<8x1xf32>
    %55 = arith.divf %53, %54 : vector<8x1xf32>
    %56 = vector.broadcast %55 : vector<8x1xf32> to vector<8x32xf32>
    %57 = arith.subf %51, %56 : vector<8x32xf32>
    %58 = arith.mulf %57, %57 : vector<8x32xf32>
    %cst_27 = arith.constant dense<0.000000e+00> : vector<8xf32>
    %59 = vector.multi_reduction <add>, %58, %cst_27 [1] : vector<8x32xf32> to vector<8xf32>
    %60 = vector.shape_cast %59 : vector<8xf32> to vector<8x1xf32>
    %cst_28 = arith.constant 3.200000e+01 : f32
    %61 = vector.broadcast %cst_28 : f32 to vector<8x1xf32>
    %62 = arith.divf %60, %61 : vector<8x1xf32>
    %63 = vector.broadcast %55 : vector<8x1xf32> to vector<8x32xf32>
    %64 = arith.subf %51, %63 : vector<8x32xf32>
    %cst_29 = arith.constant 9.99999974E-6 : f32
    %65 = vector.broadcast %cst_29 : f32 to vector<8x1xf32>
    %66 = arith.addf %62, %65 : vector<8x1xf32>
    %67 = math.rsqrt %66 : vector<8x1xf32>
    %68 = vector.broadcast %67 : vector<8x1xf32> to vector<8x32xf32>
    %69 = arith.mulf %64, %68 : vector<8x32xf32>
    %c0_30 = arith.constant 0 : index
    %c0_31 = arith.constant 0 : index
    %70 = vector.load %arg10[%c0_30, %c0_31] : memref<1x32xf32, #tpu.memory_space<vmem>>, vector<1x32xf32>
    %71 = vector.broadcast %70 : vector<1x32xf32> to vector<8x32xf32>
    %72 = arith.mulf %69, %71 : vector<8x32xf32>
    %c0_32 = arith.constant 0 : index
    %c0_33 = arith.constant 0 : index
    %73 = vector.load %arg11[%c0_32, %c0_33] : memref<1x32xf32, #tpu.memory_space<vmem>>, vector<1x32xf32>
    %74 = vector.broadcast %73 : vector<1x32xf32> to vector<8x32xf32>
    %75 = arith.addf %72, %74 : vector<8x32xf32>
    %c0_34 = arith.constant 0 : index
    %c0_35 = arith.constant 0 : index
    %c0_36 = arith.constant 0 : index
    %76 = vector.load %arg12[%c0_34, %c0_35, %c0_36] : memref<1x8x32xf32, #tpu.memory_space<vmem>>, vector<1x8x32xf32>
    %77 = vector.shape_cast %76 : vector<1x8x32xf32> to vector<8x32xf32>
    %78 = vector.shape_cast %75 : vector<8x32xf32> to vector<1x8x32xf32>
    tpu.vector_store %arg12[%c0_34, %c0_35, %c0_36], %78 {strides = array<i32>} : memref<1x8x32xf32, #tpu.memory_space<vmem>>, vector<1x8x32xf32>,
    return
  }
  func.func @transform_0(%arg0: i32, %arg1: i32) -> (i32, i32, i32) {
    %c0_i32 = arith.constant 0 : i32
    %c0_i32_0 = arith.constant 0 : i32
    return %arg0, %arg1, %c0_i32 : i32, i32, i32
  }
  func.func @transform_1(%arg0: i32, %arg1: i32) -> (i32, i32, i32) {
    %c0_i32 = arith.constant 0 : i32
    %c0_i32_0 = arith.constant 0 : i32
    %c0_i32_1 = arith.constant 0 : i32
    return %arg0, %c0_i32, %c0_i32_0 : i32, i32, i32
  }
  func.func @transform_2(%arg0: i32, %arg1: i32) -> (i32, i32) {
    %c0_i32 = arith.constant 0 : i32
    %c0_i32_0 = arith.constant 0 : i32
    %c0_i32_1 = arith.constant 0 : i32
    return %c0_i32, %c0_i32_0 : i32, i32
  }
  func.func @transform_3(%arg0: i32, %arg1: i32) -> (i32, i32) {
    %c0_i32 = arith.constant 0 : i32
    %c0_i32_0 = arith.constant 0 : i32
    %c0_i32_1 = arith.constant 0 : i32
    return %c0_i32, %c0_i32_0 : i32, i32
  }
  func.func @transform_4(%arg0: i32, %arg1: i32) -> (i32, i32) {
    %c0_i32 = arith.constant 0 : i32
    %c0_i32_0 = arith.constant 0 : i32
    %c0_i32_1 = arith.constant 0 : i32
    return %c0_i32, %c0_i32_0 : i32, i32
  }
  func.func @transform_5(%arg0: i32, %arg1: i32) -> (i32, i32) {
    %c0_i32 = arith.constant 0 : i32
    %c0_i32_0 = arith.constant 0 : i32
    %c0_i32_1 = arith.constant 0 : i32
    return %c0_i32, %c0_i32_0 : i32, i32
  }
  func.func @transform_6(%arg0: i32, %arg1: i32) -> (i32, i32) {
    %c0_i32 = arith.constant 0 : i32
    %c0_i32_0 = arith.constant 0 : i32
    %c0_i32_1 = arith.constant 0 : i32
    return %c0_i32, %c0_i32_0 : i32, i32
  }
  func.func @transform_7(%arg0: i32, %arg1: i32) -> (i32, i32) {
    %c0_i32 = arith.constant 0 : i32
    %c0_i32_0 = arith.constant 0 : i32
    %c0_i32_1 = arith.constant 0 : i32
    return %c0_i32, %c0_i32_0 : i32, i32
  }
  func.func @transform_8(%arg0: i32, %arg1: i32) -> (i32, i32) {
    %c0_i32 = arith.constant 0 : i32
    %c0_i32_0 = arith.constant 0 : i32
    %c0_i32_1 = arith.constant 0 : i32
    return %c0_i32, %c0_i32_0 : i32, i32
  }
  func.func @transform_9(%arg0: i32, %arg1: i32) -> (i32, i32) {
    %c0_i32 = arith.constant 0 : i32
    %c0_i32_0 = arith.constant 0 : i32
    %c0_i32_1 = arith.constant 0 : i32
    return %c0_i32, %c0_i32_0 : i32, i32
  }
  func.func @transform_10(%arg0: i32, %arg1: i32) -> (i32, i32, i32) {
    %c0_i32 = arith.constant 0 : i32
    %c0_i32_0 = arith.constant 0 : i32
    return %arg0, %arg1, %c0_i32 : i32, i32, i32
  }
}

</mosaic_0001>

<bundles_post_ra>
// kernel: tpu_custom_call.1
= control target key start
LH: loop header
LB: loop body
LE: loop exit
PB: predicated region body
PF: predicated region fallthrough
CT: control target
= control target key end

     0   :  { %s3580_s0 = inlined_call_operand.hbm [shape: f32[2,8,32], index: 0, kind: input, shape index: {}]   ;;  %s3581_s1 = inlined_call_operand.hbm [shape: f32[2,8,32], index: 1, kind: input, shape index: {}]   ;;  %s3582_s2 = inlined_call_operand.hbm [shape: f32[32,32], index: 2, kind: input, shape index: {}]   ;;  %s3583_s3 = inlined_call_operand.hbm [shape: f32[1,32], index: 3, kind: input, shape index: {}]   ;;  %s3584_s4 = inlined_call_operand.hbm [shape: f32[32,64], index: 4, kind: input, shape index: {}]   ;;  %s3585_s5 = inlined_call_operand.hbm [shape: f32[1,64], index: 5, kind: input, shape index: {}]   ;;  %s3586_s6 = inlined_call_operand.hbm [shape: f32[32,32], index: 6, kind: input, shape index: {}]   ;;  %s3587_s7 = inlined_call_operand.hbm [shape: f32[1,32], index: 7, kind: input, shape index: {}]   ;;  %s3588_s8 = inlined_call_operand.hbm [shape: f32[1,32], index: 8, kind: input, shape index: {}]   ;;  %s3589_s9 = inlined_call_operand.hbm [shape: f32[1,32], index: 9, kind: input, shape index: {}]   ;;  %s3590_s10 = inlined_call_operand.hbm [shape: f32[2,8,32], index: 10, kind: output, shape index: {}]  }
   0x1   :  { %3600 = sst [smem:[#allocation30_spill]] %s3581_s1 }
   0x2   :  { %3601 = sst [smem:[#allocation31_spill]] %s3582_s2 }
   0x3   :  { %3602 = sst [smem:[#allocation32_spill]] %s3583_s3 }
   0x4   :  { %3603 = sst [smem:[#allocation33_spill]] %s3584_s4 }
   0x5   :  { %3604 = sst [smem:[#allocation34_spill]] %s3585_s5 }
   0x6   :  { %3605 = sst [smem:[#allocation35_spill]] %s3586_s6 }
   0x7   :  { %3606 = sst [smem:[#allocation36_spill]] %s3587_s7 }
   0x8   :  { %3607 = sst [smem:[#allocation37_spill]] %s3590_s10 }
   0x9   :  { %15 = vsyncpa [#allocation3], 0 }
   0xa   :  { %17 = vsyncpa [#allocation3 + $0x1], 0 }
   0xb   :  { %18 = vsyncpa [#allocation6], 0 }
   0xc   :  { %20 = vsyncpa [#allocation6 + $0x1], 0 }
   0xd   :  { %21 = vsyncpa [#allocation9], 0 }
   0xe   :  { %22 = vsyncpa [#allocation12], 0 }
   0xf   :  { %23 = vsyncpa [#allocation15], 0 }
  0x10   :  { %24 = vsyncpa [#allocation18], 0 }
  0x11   :  { %25 = vsyncpa [#allocation4], 0 }
  0x12   :  { %27 = vsyncpa [#allocation4 + $0x1], 0  ;;  %s3065_s13 = smov 0   ;;  %s3067_s14 = smov 0  }
  0x13   :  { %s3069_s15 = smov 0   ;;  %s3071_s16 = smov 0  }
  0x14   :  { %s3073_s17 = smov 0   ;;  %s3075_s18 = smov 0  }
  0x15 LB: > { %3608 = sst [smem:[#allocation28_spill]] %s2975_s16  ;;  %s3096_s19 = sadd.s32 4294967295, %s2983_s18   ;;  %s2983_s18 = sphi %s3075_s18, %s33_s18   ;;  %s2979_s17 = sphi %s3073_s17, %s3649_s17   ;;  %s2975_s16 = sphi %s3071_s16, %s3648_s16   ;;  %s2971_s15 = sphi %s3069_s15, %s3647_s15   ;;  %s2967_s14 = sphi %s3067_s14, %s3646_s14   ;;  %s2963_s13 = sphi %s3065_s13, %s3645_s13  }
  0x16   : > { %p2239_p0 = scmp.ge.s32.totalorder %s2983_s18, 1  ;;  %p3594_p1 = scmp.eq.s32.totalorder %s3096_s19, 0 }
  0x17   : > { %p300_p2 = scmp.lt.s32.totalorder %s2983_s18, 3  ;;  %s2985_s21 = smov [#allocation7]  }
  0x18   : > { %s312_s22 = sshll.u32 %s2985_s21, 4  ;;  %s2986_s24 = smov [#allocation8]   ;;  %s3105_s22 = int_to_ptr.vmem [resolvable:$true] %s312_s22 }
  0x19   : > { %p3101_p3 = pnand %p2239_p0, %p300_p2  ;;  %s326_s25 = sshll.u32 %s2986_s24, 4  ;;  %s3116_s25 = int_to_ptr.vmem [resolvable:$true] %s326_s25 }
  0x1a   : > { %s2987_s26 = smov [#allocation11]   ;;  %s3612_s2 = sld [smem:[#allocation31_spill]] }
  0x1b   : > { %s3609_s20 = scalar_select %p3101_p3, 1, 0 }
  0x1c   : > { %p2451_p4 = pneg %p3101_p3  ;;  %s3118_s27 = sshll.u32 %s2987_s26, 4  ;;  %s351_s27 = int_to_ptr.vmem [resolvable:$true] %s3118_s27 }
  0x1d   : > { %3610 = sst [smem:[#allocation29_spill]] %s3609_s20 }
  0x1e   : > { %p3112_p6 = pnand %p2451_p4, %p3594_p1 }
  0x20   : > { %s2593_s30 = scalar_lea.hbm %s3612_s2, 512  ;;  %p3128_p8 = pneg %p3112_p6 }
  0x21   : > { %p2594_p7 = scmp.ne.s32.totalorder %s3612_s2, %s2593_s30  ;;  %p2600_p11 = scmp.lt.u32.totalorder %s2593_s30, %s3612_s2 }
  0x23   : > { %p2596_p9 = pnand %p3128_p8, %p2594_p7 }
  0x25   : > { %p2597_p10 = pneg %p2596_p9 }
  0x27   : > { %p2602_p12 = pnand %p2600_p11, %p2597_p10 }
  0x29   : > { %2605 = shalt.err (!%p2602_p12)
}
  0x2a   : > { %s2606_s28 = scalar_lea.vmem %s3105_s22, 512  ;;  %p2614_p4 = scmp.lt.s32.totalorder %s3105_s22, %s3105_s22 }
  0x2b   : > { %p2607_p13 = scmp.ne.s32.totalorder %s3105_s22, %s2606_s28  ;;  %p2615_p5 = scmp.lt.s32.totalorder %s2606_s28, %s2606_s28 }
  0x2d   : > { %p2609_p0 = pnand %p2607_p13, %p3128_p8  ;;  %p2616_p7 = por %p2615_p5, %p2614_p4 }
  0x2f   : > { %p2610_p2 = pneg %p2609_p0 }
  0x31   : > { %p2617_p9 = pnand %p2616_p7, %p2610_p2 }
  0x33   : > { %2620 = shalt.err (!%p2617_p9)
}
  0x34   : > { %s3596_s29 = smov 128   ;;  %s2989_s30 = smov 8  }
  0x35   : > { %2454 = dma.hbm_to_vmem [thread:$0]  (!%p3112_p6), %s3612_s2, 512, %s3105_s22, [#allocation6], %s3596_s29, %s3596_s29, %s2989_s30  }
  0x36   : > { %s3614_s3 = sld [smem:[#allocation32_spill]] }
  0x3c   : > { %s2621_s28 = scalar_lea.hbm %s3614_s3, 16 }
  0x3d   : > { %p2622_p5 = scmp.ne.s32.totalorder %s3614_s3, %s2621_s28  ;;  %p2628_p12 = scmp.lt.u32.totalorder %s2621_s28, %s3614_s3 }
  0x3f   : > { %p2624_p10 = pnand %p2622_p5, %p3128_p8 }
  0x41   : > { %p2625_p11 = pneg %p2624_p10 }
  0x43   : > { %p2630_p13 = pnand %p2628_p12, %p2625_p11 }
  0x45   : > { %2633 = shalt.err (!%p2630_p13)
}
  0x46   : > { %s2634_s22 = scalar_lea.vmem %s3116_s25, 16  ;;  %s2641_s10 = scalar_lea.vmem %s3116_s25, 32 }
  0x47   : > { %p2635_p0 = scmp.ne.s32.totalorder %s3116_s25, %s2634_s22  ;;  %p2642_p7 = scmp.lt.s32.totalorder %s3116_s25, %s3116_s25 }
  0x48   : > { %p2643_p9 = scmp.lt.s32.totalorder %s2641_s10, %s2634_s22 }
  0x49   : > { %p2637_p2 = pnand %p2635_p0, %p3128_p8 }
  0x4a   : > { %p2644_p5 = por %p2643_p9, %p2642_p7 }
  0x4b   : > { %p2638_p4 = pneg %p2637_p2 }
  0x4d   : > { %p2645_p10 = pnand %p2644_p5, %p2638_p4 }
  0x4f   : > { %2648 = shalt.err (!%p2645_p10)
}
  0x50   : > { %2457 = dma.hbm_to_vmem [thread:$0]  (!%p3112_p6), %s3614_s3, 16, %s3116_s25, [#allocation9]  }
  0x51   : > { %s3615_s5 = sld [smem:[#allocation34_spill]] }
  0x57   : > { %s2649_s12 = scalar_lea.hbm %s3615_s5, 16 }
  0x58   : > { %p2650_p11 = scmp.ne.s32.totalorder %s3615_s5, %s2649_s12  ;;  %p2656_p0 = scmp.lt.u32.totalorder %s2649_s12, %s3615_s5 }
  0x5a   : > { %p2652_p12 = pnand %p2650_p11, %p3128_p8 }
  0x5c   : > { %p2653_p13 = pneg %p2652_p12 }
  0x5e   : > { %p2658_p2 = pnand %p2656_p0, %p2653_p13 }
  0x60   : > { %2661 = shalt.err (!%p2658_p2)
}
  0x61   : > { %s2662_s10 = scalar_lea.vmem %s351_s27, 16  ;;  %s2669_s25 = scalar_lea.vmem %s351_s27, 32 }
  0x62   : > { %p2663_p4 = scmp.ne.s32.totalorder %s351_s27, %s2662_s10  ;;  %p2670_p5 = scmp.lt.s32.totalorder %s351_s27, %s351_s27 }
  0x63   : > { %p2671_p10 = scmp.lt.s32.totalorder %s2669_s25, %s2662_s10 }
  0x64   : > { %p2665_p7 = pnand %p2663_p4, %p3128_p8 }
  0x65   : > { %p2672_p1 = por %p2671_p10, %p2670_p5 }
  0x66   : > { %p2666_p9 = pneg %p2665_p7 }
  0x68   : > { %p2673_p3 = pnand %p2672_p1, %p2666_p9 }
  0x6a   : > { %2676 = shalt.err (!%p2673_p3)
}
  0x6b   : > { %2463 = dma.hbm_to_vmem [thread:$0]  (!%p3112_p6), %s3615_s5, 16, %s351_s27, [#allocation12]  }
  0x6c   : > { %s2990_s20 = smov [#allocation14]   ;;  %s2991_s12 = smov [#allocation10]  }
  0x6d   : > { %s374_s11 = sshll.u32 %s2990_s20, 4  ;;  %s336_s24 = sshll.u32 %s2991_s12, 4  ;;  %s375_s11 = int_to_ptr.vmem [resolvable:$true] %s374_s11  ;;  %s337_s24 = int_to_ptr.vmem [resolvable:$true] %s336_s24 }
  0x6e   : > { %s3616_s7 = sld [smem:[#allocation36_spill]] }
  0x74   : > { %s2677_s22 = scalar_lea.hbm %s3616_s7, 16 }
  0x75   : > { %p2678_p1 = scmp.ne.s32.totalorder %s3616_s7, %s2677_s22  ;;  %p2684_p12 = scmp.lt.u32.totalorder %s2677_s22, %s3616_s7 }
  0x77   : > { %p2680_p3 = pnand %p2678_p1, %p3128_p8 }
  0x79   : > { %p2681_p11 = pneg %p2680_p3 }
  0x7b   : > { %p2686_p13 = pnand %p2684_p12, %p2681_p11 }
  0x7d   : > { %2689 = shalt.err (!%p2686_p13)
}
  0x7e   : > { %s2690_s27 = scalar_lea.vmem %s375_s11, 16  ;;  %s2697_s16 = scalar_lea.vmem %s375_s11, 32 }
  0x7f   : > { %p2691_p0 = scmp.ne.s32.totalorder %s375_s11, %s2690_s27  ;;  %p2698_p7 = scmp.lt.s32.totalorder %s375_s11, %s375_s11 }
  0x80   : > { %p2699_p9 = scmp.lt.s32.totalorder %s2697_s16, %s2690_s27 }
  0x81   : > { %p2693_p2 = pnand %p2691_p0, %p3128_p8 }
  0x82   : > { %p2700_p5 = por %p2699_p9, %p2698_p7 }
  0x83   : > { %p2694_p4 = pneg %p2693_p2 }
  0x85   : > { %p2701_p10 = pnand %p2700_p5, %p2694_p4 }
  0x87   : > { %2704 = shalt.err (!%p2701_p10)
}
  0x88   : > { %2469 = dma.hbm_to_vmem [thread:$0]  (!%p3112_p6), %s3616_s7, 16, %s375_s11, [#allocation15]  }
  0x89   : > { %s3617_s4 = sld [smem:[#allocation33_spill]] }
  0x8f   : > { %s2705_s28 = scalar_lea.hbm %s3617_s4, 512 }
  0x90   : > { %p2706_p1 = scmp.ne.s32.totalorder %s3617_s4, %s2705_s28  ;;  %p2712_p12 = scmp.lt.u32.totalorder %s2705_s28, %s3617_s4 }
  0x92   : > { %p2708_p3 = pnand %p2706_p1, %p3128_p8 }
  0x94   : > { %p2709_p11 = pneg %p2708_p3 }
  0x96   : > { %p2714_p13 = pnand %p2712_p12, %p2709_p11 }
  0x98   : > { %2717 = shalt.err (!%p2714_p13)
}
  0x99   : > { %s2718_s27 = scalar_lea.vmem %s337_s24, 512  ;;  %p2726_p7 = scmp.lt.s32.totalorder %s337_s24, %s337_s24 }
  0x9a   : > { %p2719_p0 = scmp.ne.s32.totalorder %s337_s24, %s2718_s27  ;;  %p2727_p9 = scmp.lt.s32.totalorder %s2718_s27, %s2718_s27 }
  0x9c   : > { %p2721_p2 = pnand %p2719_p0, %p3128_p8  ;;  %p2728_p5 = por %p2727_p9, %p2726_p7 }
  0x9e   : > { %p2722_p4 = pneg %p2721_p2 }
  0xa0   : > { %p2729_p10 = pnand %p2728_p5, %p2722_p4 }
  0xa2   : > { %2732 = shalt.err (!%p2729_p10)
}
  0xa3   : > { %s3618_s11 = smov 128   ;;  %s2992_s12 = smov [#allocation13]  }
  0xa4   : > { %2460 = dma.hbm_to_vmem [thread:$0]  (!%p3112_p6), %s3617_s4, 512, %s337_s24, [#allocation9], %s3618_s11, %s3618_s11, %s2989_s30  }
  0xa5   : > { %s360_s29 = sshll.u32 %s2992_s12, 4  ;;  %s2993_s26 = smov [#allocation16]   ;;  %s361_s29 = int_to_ptr.vmem [resolvable:$true] %s360_s29 }
  0xa6   : > { %s385_s28 = sshll.u32 %s2993_s26, 4  ;;  %s3619_s6 = sld [smem:[#allocation35_spill]]  ;;  %s386_s28 = int_to_ptr.vmem [resolvable:$true] %s385_s28 }
  0xac   : > { %s2733_s25 = scalar_lea.hbm %s3619_s6, 512 }
  0xad   : > { %p2734_p1 = scmp.ne.s32.totalorder %s3619_s6, %s2733_s25  ;;  %p2740_p12 = scmp.lt.u32.totalorder %s2733_s25, %s3619_s6 }
  0xaf   : > { %p2736_p3 = pnand %p2734_p1, %p3128_p8 }
  0xb1   : > { %p2737_p11 = pneg %p2736_p3 }
  0xb3   : > { %p2742_p13 = pnand %p2740_p12, %p2737_p11 }
  0xb5   : > { %2745 = shalt.err (!%p2742_p13)
}
  0xb6   : > { %s2746_s24 = scalar_lea.vmem %s361_s29, 512  ;;  %p2754_p7 = scmp.lt.s32.totalorder %s361_s29, %s361_s29 }
  0xb7   : > { %p2747_p0 = scmp.ne.s32.totalorder %s361_s29, %s2746_s24  ;;  %p2755_p9 = scmp.lt.s32.totalorder %s2746_s24, %s2746_s24 }
  0xb9   : > { %p2749_p2 = pnand %p2747_p0, %p3128_p8  ;;  %p2756_p5 = por %p2755_p9, %p2754_p7 }
  0xbb   : > { %p2750_p4 = pneg %p2749_p2 }
  0xbd   : > { %p2757_p10 = pnand %p2756_p5, %p2750_p4 }
  0xbf   : > { %2760 = shalt.err (!%p2757_p10)
}
  0xc0   : > { %2466 = dma.hbm_to_vmem [thread:$0]  (!%p3112_p6), %s3619_s6, 512, %s361_s29, [#allocation12], %s3618_s11, %s3618_s11, %s2989_s30  }
  0xc1   : > { %s2761_s22 = scalar_lea.hbm %s3588_s8, 16 }
  0xc2   : > { %p2762_p1 = scmp.ne.s32.totalorder %s3588_s8, %s2761_s22  ;;  %p2768_p12 = scmp.lt.u32.totalorder %s2761_s22, %s3588_s8 }
  0xc4   : > { %p2764_p3 = pnand %p2762_p1, %p3128_p8 }
  0xc6   : > { %p2765_p11 = pneg %p2764_p3 }
  0xc8   : > { %p2770_p13 = pnand %p2768_p12, %p2765_p11 }
  0xca   : > { %2773 = shalt.err (!%p2770_p13)
}
  0xcb   : > { %s2774_s16 = scalar_lea.vmem %s386_s28, 16  ;;  %s2781_s30 = scalar_lea.vmem %s386_s28, 32 }
  0xcc   : > { %p2775_p0 = scmp.ne.s32.totalorder %s386_s28, %s2774_s16  ;;  %p2782_p7 = scmp.lt.s32.totalorder %s386_s28, %s386_s28 }
  0xcd   : > { %p2783_p9 = scmp.lt.s32.totalorder %s2781_s30, %s2774_s16 }
  0xce   : > { %p2777_p2 = pnand %p2775_p0, %p3128_p8 }
  0xcf   : > { %p2784_p5 = por %p2783_p9, %p2782_p7 }
  0xd0   : > { %p2778_p4 = pneg %p2777_p2 }
  0xd2   : > { %p2785_p10 = pnand %p2784_p5, %p2778_p4 }
  0xd4   : > { %2788 = shalt.err (!%p2785_p10)
}
  0xd5   : > { %2472 = dma.hbm_to_vmem [thread:$0]  (!%p3112_p6), %s3588_s8, 16, %s386_s28, [#allocation15]  }
  0xd6   : > { %s2994_s24 = smov [#allocation17]   ;;  %s2789_s26 = scalar_lea.hbm %s3589_s9, 16 }
  0xd7   : > { %s396_s2 = sshll.u32 %s2994_s24, 4  ;;  %p2790_p1 = scmp.ne.s32.totalorder %s3589_s9, %s2789_s26  ;;  %s397_s2 = int_to_ptr.vmem [resolvable:$true] %s396_s2 }
  0xd8   : > { %p2796_p12 = scmp.lt.u32.totalorder %s2789_s26, %s3589_s9 }
  0xd9   : > { %p2792_p3 = pnand %p2790_p1, %p3128_p8 }
  0xdb   : > { %p2793_p11 = pneg %p2792_p3 }
  0xdd   : > { %p2798_p13 = pnand %p2796_p12, %p2793_p11 }
  0xdf   : > { %2801 = shalt.err (!%p2798_p13)
}
  0xe0   : > { %s2802_s28 = scalar_lea.vmem %s397_s2, 16  ;;  %s2809_s27 = scalar_lea.vmem %s397_s2, 32 }
  0xe1   : > { %p2803_p0 = scmp.ne.s32.totalorder %s397_s2, %s2802_s28  ;;  %p2810_p7 = scmp.lt.s32.totalorder %s397_s2, %s397_s2 }
  0xe2   : > { %p2811_p9 = scmp.lt.s32.totalorder %s2809_s27, %s2802_s28 }
  0xe3   : > { %p2805_p2 = pnand %p2803_p0, %p3128_p8 }
  0xe4   : > { %p2812_p5 = por %p2811_p9, %p2810_p7 }
  0xe5   : > { %p2806_p4 = pneg %p2805_p2 }
  0xe7   : > { %p2813_p10 = pnand %p2812_p5, %p2806_p4 }
  0xe9   : > { %2816 = shalt.err (!%p2813_p10)
}
  0xea   : > { %2475 = dma.hbm_to_vmem [thread:$0]  (!%p3112_p6), %s3589_s9, 16, %s397_s2, [#allocation18]  }
  0xeb   : > { %s2238_s21 = sadd.s32 4294967294, %s2983_s18   ;;  %s45_s11 = sadd.s32 1, %s2979_s17 }
  0xec   : > { %p47_p8 = scmp.ge.s32.totalorder %s45_s11, 2  ;;  %s54_s23 = sadd.s32 1, %s2971_s15 }
  0xed   : > { %p61_p1 = scmp.ne.s32.totalorder %s2971_s15, %s2967_s14  ;;  %p62_p3 = scmp.eq.s32.totalorder %s2983_s18, 0 }
  0xee   : > { %s3651_s11 = smov (%p47_p8, %s45_s11), 0  ;;  %p67_p12 = scmp.ne.s32.totalorder %s2967_s14, %s2963_s13 }
  0xef   : > { %p3299_p11 = por %p62_p3, %p61_p1  ;;  %s49_s24 = ssub.s32 %s2979_s17, %s3651_s11 }
  0xf0   : > { %p287_p6 = scmp.eq.s32.totalorder %s3096_s19, 1  ;;  %p52_p13 = scmp.eq.s32.totalorder %s49_s24, 0 }
  0xf1   : > { %p3621_p0 = scmp.eq.s32.totalorder %s3096_s19, 0  ;;  %p293_p7 = scmp.eq.s32.totalorder %s2238_s21, 1 }
  0xf2   : > { %p3314_p4 = por %p287_p6, %p61_p1  ;;  %p2495_p5 = scmp.lt.s32.totalorder %s2983_s18, 2 }
  0xf3   : > { %p3310_p2 = por %p3621_p0, %p67_p12  ;;  %p3321_p9 = por %p293_p7, %p67_p12 }
  0xf4   : > { %s3623_s20 = scalar_select %p3314_p4, 1, 0 }
  0xf5   : > { %s3622_s2 = scalar_select %p3310_p2, 1, 0 }
  0xf6   : > { %s3319_s12 = scalar_select %p52_p13, %s2971_s15, %s54_s23  }
  0xf7   : > { %s3624_s26 = scalar_select %p3321_p9, 1, 0 }
  0xf8   : > { %s407_s22 = sand.u32 1, %s2971_s15   ;;  %s2250_s10 = sshll.u32 %s2979_s17, 7 }
  0xf9   : > { %s3328_s25 = sshll.u32 %s407_s22, 3  ;;  %s3333_s27 = scalar_lea.hbm %s3580_s0, %s2250_s10 }
  0xfa   : > { %s411_s16 = scalar_lea.vmem [#allocation2], %s3328_s25  ;;  %p3338_p10 = pnand %p2495_p5, %p3299_p11 }
  0xfb   : > { %s419_s30 = sshll.u32 %s411_s16, 4  ;;  %s3626_s1 = sld [smem:[#allocation30_spill]]  ;;  %s3342_s30 = int_to_ptr.vmem [resolvable:$true] %s419_s30 }
  0xfc   : > { %s408_s3 = scalar_lea.sflag [#allocation3], %s407_s22  ;;  %s2817_s4 = scalar_lea.hbm %s3333_s27, 128 }
  0xfd   : > { %p2818_p8 = scmp.ne.s32.totalorder %s3333_s27, %s2817_s4  ;;  %p2819_p1 = pneg %p3338_p10 }
  0xfe   : > { %s2822_s5 = scalar_lea.hbm %s3580_s0, 256  ;;  %p2823_p12 = scmp.lt.u32.totalorder %s3333_s27, %s3580_s0 }
  0xff   : > { %p2820_p3 = pnand %p2819_p1, %p2818_p8  ;;  %p2824_p6 = scmp.lt.u32.totalorder %s2822_s5, %s2817_s4 }
 0x100   : > { %p2826_p0 = scmp.lt.u32.totalorder %s2817_s4, %s3333_s27 }
 0x101   : > { %s3347_s28 = scalar_lea.hbm %s3626_s1, %s2250_s10  ;;  %p2821_p11 = pneg %p2820_p3 }
 0x102   : > { %p2825_p13 = por %p2824_p6, %p2823_p12 }
 0x104   : > { %p2827_p7 = por %p2826_p0, %p2825_p13 }
 0x106   : > { %p2828_p5 = pnand %p2827_p7, %p2821_p11 }
 0x108   : > { %2831 = shalt.err (!%p2828_p5)
}
 0x109   : > { %s2832_s22 = scalar_lea.vmem %s3342_s30, 128  ;;  %s2995_s10 = smov [#allocation2]  }
 0x10a   : > { %p2833_p8 = scmp.ne.s32.totalorder %s3342_s30, %s2832_s22  ;;  %s2837_s23 = sshll.u32 %s2995_s10, 4  ;;  %s2838_s23 = int_to_ptr.vmem [resolvable:$false] %s2837_s23 }
 0x10b   : > { %s2839_s6 = scalar_lea.vmem %s2838_s23, 256  ;;  %p2840_p4 = scmp.lt.s32.totalorder %s3342_s30, %s2838_s23 }
 0x10c   : > { %p2835_p3 = pnand %p2833_p8, %p2819_p1  ;;  %p2841_p12 = scmp.lt.s32.totalorder %s2839_s6, %s2832_s22 }
 0x10e   : > { %p2836_p9 = pneg %p2835_p3  ;;  %p2842_p6 = por %p2841_p12, %p2840_p4 }
 0x110   : > { %p2843_p13 = pnand %p2842_p6, %p2836_p9 }
 0x112   : > { %2846 = shalt.err (!%p2843_p13)
}
 0x113   : > { %2479 = dma.hbm_to_vmem [thread:$0]  (!%p3338_p10), %s3333_s27, 128, %s3342_s30, %s408_s3  }
 0x114   : > { %s426_s4 = sand.u32 1, %s2983_s18   ;;  %s430_s5 = scalar_lea.vmem [#allocation5], %s3328_s25 }
 0x115   : > { %s437_s7 = sshll.u32 %s430_s5, 4  ;;  %s427_s24 = scalar_lea.sflag [#allocation6], %s426_s4  ;;  %s438_s7 = int_to_ptr.vmem [resolvable:$true] %s437_s7 }
 0x116   : > { %s2847_s29 = scalar_lea.hbm %s3347_s28, 128  ;;  %s2852_s10 = scalar_lea.hbm %s3626_s1, 256 }
 0x117   : > { %p2848_p4 = scmp.ne.s32.totalorder %s3347_s28, %s2847_s29  ;;  %p2853_p0 = scmp.lt.u32.totalorder %s3347_s28, %s3626_s1 }
 0x118   : > { %p2854_p7 = scmp.lt.u32.totalorder %s2852_s10, %s2847_s29  ;;  %p2856_p8 = scmp.lt.u32.totalorder %s2847_s29, %s3347_s28 }
 0x119   : > { %p2850_p9 = pnand %p2848_p4, %p2819_p1 }
 0x11a   : > { %p2855_p5 = por %p2854_p7, %p2853_p0 }
 0x11b   : > { %p2851_p11 = pneg %p2850_p9 }
 0x11c   : > { %p2857_p3 = por %p2856_p8, %p2855_p5 }
 0x11e   : > { %p2858_p12 = pnand %p2857_p3, %p2851_p11 }
 0x120   : > { %2861 = shalt.err (!%p2858_p12)
}
 0x121   : > { %s2862_s3 = scalar_lea.vmem %s438_s7, 128  ;;  %s2996_s25 = smov [#allocation5]  }
 0x122   : > { %p2863_p6 = scmp.ne.s32.totalorder %s438_s7, %s2862_s3  ;;  %s2867_s27 = sshll.u32 %s2996_s25, 4  ;;  %s2868_s27 = int_to_ptr.vmem [resolvable:$false] %s2867_s27 }
 0x123   : > { %s2869_s30 = scalar_lea.vmem %s2868_s27, 256  ;;  %p2870_p9 = scmp.lt.s32.totalorder %s438_s7, %s2868_s27 }
 0x124   : > { %p2865_p13 = pnand %p2863_p6, %p2819_p1  ;;  %p2871_p2 = scmp.lt.s32.totalorder %s2869_s30, %s2862_s3 }
 0x126   : > { %p2866_p4 = pneg %p2865_p13  ;;  %p2872_p0 = por %p2871_p2, %p2870_p9 }
 0x128   : > { %p2873_p7 = pnand %p2872_p0, %p2866_p4 }
 0x12a   : > { %2876 = shalt.err (!%p2873_p7)
}
 0x12b   : > { %2482 = dma.hbm_to_vmem [thread:$0]  (!%p3338_p10), %s3347_s28, 128, %s438_s7, %s427_s24  }
 0x12c   : > { %s3627_s4 = sld [smem:[#allocation29_spill]] }
 0x132   : > { %p3628_p11 = scmp.ne.s32.totalorder %s3627_s4, 0 }
 0x133   : > { %s3398_s5 = sand.u32 (!%p3628_p11), 1, %s2967_s14   ;;  %p3629_p2 = scmp.ne.s32.totalorder (!%p3628_p11), %s3622_s2, 0 }
 0x134   : > { %446 = sbr.rel (%p3628_p11) target bundleno = 2387 (0x953), region = 60  ;;  %s3401_s29 = sshll.u32 (!%p3628_p11), %s3398_s5, 3 }
 0x135   : > { %s449_s16 = scalar_lea.sflag (!%p3628_p11), [#allocation3], %s3398_s5  ;;  %s452_s22 = scalar_lea.vmem (!%p3628_p11), [#allocation2], %s3401_s29 }
 0x13b   : > { %2930 = dma.done.wait (%p3629_p2), %s449_s16, 128  }
 0x13c   : > { %2932 = vsyncadd (%p3629_p2), %s449_s16, 4294967168  ;;  %s457_s21 = sand.u32 1, %s3096_s19   ;;  %s461_s7 = scalar_lea.vmem [#allocation5], %s3401_s29 }
 0x13d   : > { %s458_s28 = scalar_lea.sflag [#allocation6], %s457_s21 }
 0x13e   : > { %2934 = dma.done.wait (%p3629_p2), %s458_s28, 128  }
 0x13f   : > { %2936 = vsyncadd (%p3629_p2), %s458_s28, 4294967168  ;;  %p3630_p10 = scmp.eq.s32.totalorder %s3096_s19, 0 }
 0x141   : > { %2938 = dma.done.wait (%p3630_p10), [#allocation6], 512   ;;  %p3631_p1 = pmov %p3630_p10 }
 0x143   : > { %2940 = vsyncadd (%p3631_p1), [#allocation6], 4294966784  ;;  %p3632_p5 = pmov %p3631_p1 }
 0x144   : > { %p3633_p8 = pmov %p3631_p1 }
 0x145   : > { %2942 = dma.done.wait (%p3632_p5), [#allocation9], 528  }
 0x146   : > { %2944 = vsyncadd (%p3633_p8), [#allocation9], 4294966768  ;;  %p3634_p3 = pmov %p3631_p1 }
 0x147   : > { %p3635_p12 = pmov %p3631_p1 }
 0x148   : > { %2946 = dma.done.wait (%p3634_p3), [#allocation12], 528  }
 0x149   : > { %2948 = vsyncadd (%p3635_p12), [#allocation12], 4294966768  ;;  %p3636_p6 = pmov %p3631_p1 }
 0x14a   : > { %p3637_p13 = pmov %p3631_p1 }
 0x14b   : > { %2950 = dma.done.wait (%p3636_p6), [#allocation15], 32  }
 0x14c   : > { %2952 = vsyncadd (%p3637_p13), [#allocation15], 4294967264  ;;  %p3638_p4 = pmov %p3631_p1 }
 0x14d   : > { %p3639_p9 = pmov %p3631_p1 }
 0x14e   : > { %2954 = dma.done.wait (%p3638_p4), [#allocation18], 16  }
 0x14f   : > { %2956 = vsyncadd (%p3639_p9), [#allocation18], 4294967280  ;;  %v2997_v0 = vmov 0.0|0.0   ;;  %vm2998_vm0 = vmmov 0   ;;  %v2999_v1 = vmov 0.0   ;;  %v622_v2 = vld [vmem:[#allocation10] sm:$0xff]  ;;  %v1144_v34 = vlaneseq }
 0x150   : > { %2401 = vmatprep.subr.bf16.mxu1 %v2997_v0  ;;  %2341 = vmatprep.mubr.msk.f32.mxu1 %vm2998_vm0, %v2999_v1  ;;  %v623_v3 = vld [vmem:[#allocation10 + $0x8] sm:$0xff]  ;;  %v624_v4 = vld [vmem:[#allocation10 + $0x10] sm:$0xff]  ;;  %v625_v6 = vld [vmem:[#allocation10 + $0x18] sm:$0xff]  ;;  %vm548_vm1 = vcmask 261120   ;;  %s3000_s19 = smov 104   ;;  %s3001_s2 = smov 120  }
 0x151   : > { %2395 = vmatprep.subr.bf16.mxu0 %v2997_v0  ;;  %2330 = vmatprep.mubr.msk.f32.mxu0 %vm2998_vm0, %v2999_v1  ;;  %v2402_v5 = vpack.c.bf16 %v623_v3, %v622_v2  ;;  %v537_v7 = vld [vmem:[#allocation7] sm:$0xff]  ;;  %v538_v8 = vld [vmem:[#allocation7 + $0x8] sm:$0xff]  ;;  %v539_v9 = vld [vmem:[#allocation7 + $0x10] sm:$0xff]  ;;  %v2405_v11 = vpack.c.bf16 %v625_v6, %v624_v4  ;;  %s3002_s24 = smov 112   ;;  %vm851_vm2 = vcmask 64512   ;;  %v3480_v35 = vshrl.u32 %v1144_v34, 7 }
 0x152   : > { %v540_v10 = vld [vmem:[#allocation7 + $0x18] sm:$0xff]  ;;  %v2396_v12 = vpack.c.bf16 %v538_v8, %v537_v7  ;;  %v3448_v15 = vld [vmem:[%s452_s22] sm:$0xff]  ;;  %v1150_v36 = vand.u32 127, %v1144_v34  ;;  %s3003_s10 = smov 96   ;;  %s3006_s23 = smov 16   ;;  %vm1923_vm4 = vcmask 130048  }
 0x153   : > { %2403 = vmatpush3.bf16.msra.mxu1 %v2402_v5  ;;  %v2399_v13 = vpack.c.bf16 %v540_v10, %v539_v9  ;;  %v536_v14 = vld [vmem:[%s461_s7] sm:$0xff]  ;;  %v2267_v16 = vld [vmem:[#allocation11] ss:$0 sm:$0xff]  ;;  %v2265_v20 = vld [vmem:[#allocation8] ss:$0 sm:$0xff]  ;;  %s3007_s6 = smov 8  }
 0x154   : > { %2404 = vmatprep.subr.bf16.mxu1 %v2997_v0  ;;  %2397 = vmatpush3.bf16.msra.mxu0 %v2396_v12  ;;  %vm1151_vm3 = vcmp.ge.s32.totalorder %v3480_v35, %v1150_v36  ;;  %s3008_s3 = smov 24   ;;  %vm1925_vm5 = vcmask 195584   ;;  %s3640_s25 = sld [smem:[#allocation28_spill]] }
 0x155   : > { %2398 = vmatprep.subr.bf16.mxu0 %v2997_v0  ;;  %s534_s30 = scalar_lea.vmem [#allocation19], %s3401_s29  ;;  %s3641_s21 = sld [smem:[#allocation37_spill]] }
 0x156   : > { %s2058_s4 = sshll.u32 %s534_s30, 4  ;;  %s2044_s7 = scalar_lea.sflag [#allocation4], %s3398_s5  ;;  %s3532_s4 = int_to_ptr.vmem [resolvable:$true] %s2058_s4 }
 0x157   : > { %2406 = vmatpush3.bf16.msra.mxu1 %v2405_v11  ;;  %p3642_p7 = scmp.ne.s32.totalorder %s3623_s20, 0  ;;  %s3009_s29 = smov [#allocation19]  }
 0x158   : > { %2344 = vmatprep.subr.mxu1 %v2999_v1  ;;  %2400 = vmatpush3.bf16.msra.mxu0 %v2399_v13 }
 0x159   : > { %2354 = vmatprep.subr.mxu0 %v2999_v1 }
 0x15a   : > { %2342 = vmatmul.mubr.msk.f32.vlgmr.msra.gmra.mrb[0].mxu1 %vm548_vm1, %v536_v14  ;;  %s2288_s27 = sshll.u32 %s3640_s25, 7 }
 0x15b   : > { %2346 = vmatprep.mubr.msk.f32.mxu1 %vm2998_vm0, %v2999_v1  ;;  %2331 = vmatmul.mubr.msk.f32.vlgmr.msra.gmra.mrb[0].mxu0 %vm548_vm1, %v3448_v15  ;;  %s3530_s28 = scalar_lea.hbm %s3641_s21, %s2288_s27 }
 0x15c   : > { %2356 = vmatprep.mubr.msk.f32.mxu0 %vm2998_vm0, %v2999_v1 }
 0x22d   : > { %v702_v17 = vpop.f32.mrb[0].mxu1 }
 0x22e   : > { %v3458_v18 = vadd.f32 %v2267_v16, %v702_v17  ;;  %v2343_v19 = vpop.f32.mrb[1].mxu1  ;;  %v618_v21 = vpop.f32.mrb[0].mxu0 }
 0x22f   : > { %v2332_v22 = vpop.f32.mrb[1].mxu0  ;;  %v619_v23 = vadd.f32 %v2265_v20, %v618_v21 }
 0x230   : > { %720 = vrot.lane.b32.xlu1 %v3458_v18, %s3000_s19  ;;  %714 = vrot.lane.b32.xlu0 %v3458_v18, %s3001_s2 }
 0x234   : > { %717 = vrot.lane.b32.xlu0 %v3458_v18, %s3002_s24  ;;  %707 = vrot.lane.b32.xlu1 %v619_v23, %s3001_s2  ;;  %s2881_s2 = sshll.u32 %s3009_s29, 4  ;;  %s2882_s2 = int_to_ptr.vmem [resolvable:$false] %s2881_s2 }
 0x235   : > { %p2884_p10 = scmp.lt.s32.totalorder %s3532_s4, %s2882_s2 }
 0x238   : > { %709 = vrot.lane.b32.xlu0 %v619_v23, %s3002_s24  ;;  %711 = vrot.lane.b32.xlu1 %v619_v23, %s3000_s19  ;;  %s2877_s19 = scalar_lea.vmem %s3532_s4, 128  ;;  %s2883_s24 = scalar_lea.vmem %s2882_s2, 256 }
 0x239   : > { %p2878_p0 = scmp.ne.s32.totalorder %s3532_s4, %s2877_s19  ;;  %p2885_p1 = scmp.lt.s32.totalorder %s2883_s24, %s2877_s19 }
 0x23b   : > { %p2879_p11 = pnand %p2878_p0, %p3642_p7  ;;  %p2886_p5 = por %p2885_p1, %p2884_p10 }
 0x23d   : > { %p2880_p2 = pneg %p2879_p11 }
 0x23f   : > { %p2887_p8 = pnand %p2886_p5, %p2880_p2 }
 0x256   : > { %723 = vxpose.xlu0.b32.start.end [1/1] (short) (narrow) %v3458_v18, 8 }
 0x2a2   : > { %v715_v24 = vpop.permute.xlu0 %714  ;;  %v721_v26 = vpop.permute.xlu1 %720 }
 0x2a3   : > { %755 = vxpose.xlu1.b32.start.end [1/1] (short) (narrow) %v715_v24, 8 }
 0x2a6   : > { %v718_v25 = vpop.permute.xlu0 %717  ;;  %v708_v29 = vpop.permute.xlu1 %707 }
 0x2a7   : > { %787 = vxpose.xlu0.b32.start.end [1/1] (short) (narrow) %v718_v25, 8 }
 0x2aa   : > { %v710_v27 = vpop.permute.xlu0 %709  ;;  %v712_v30 = vpop.permute.xlu1 %711 }
 0x2ab   : > { %819 = vxpose.xlu0.b32.start.end [1/1] (short) (narrow) %v721_v26, 8 }
 0x2d6   : > { %v739_v28 = vpop.trf.xlu0 }
 0x2d7   : > { %2345 = vmatpush3.msra.mxu1 %v739_v28 }
 0x2d8   : > { %2347 = vmatmul.mubr.msk.f32.vlgmr.msra.gmra.mrb[2].mxu1 %vm851_vm2, %v619_v23  ;;  %2349 = vmatprep.subr.mxu1 %v2999_v1 }
 0x2d9   : > { %2351 = vmatprep.mubr.msk.f32.mxu1 %vm2998_vm0, %v2999_v1 }
 0x323   : > { %v771_v31 = vpop.trf.xlu1 }
 0x324   : > { %2350 = vmatpush3.msra.mxu1 %v771_v31 }
 0x325   : > { %2352 = vmatmul.mubr.msk.f32.vlgmr.msra.gmra.mrb[4].mxu1 %vm851_vm2, %v708_v29  ;;  %2359 = vmatprep.subr.mxu1 %v2999_v1 }
 0x326   : > { %2361 = vmatprep.mubr.msk.f32.mxu1 %vm2998_vm0, %v2999_v1 }
 0x327   : > { %v803_v32 = vpop.trf.xlu0 }
 0x328   : > { %2355 = vmatpush3.msra.mxu0 %v803_v32 }
 0x329   : > { %2357 = vmatmul.mubr.msk.f32.vlgmr.msra.gmra.mrb[2].mxu0 %vm851_vm2, %v710_v27  ;;  %2364 = vmatprep.subr.mxu0 %v2999_v1 }
 0x32a   : > { %2366 = vmatprep.mubr.msk.f32.mxu0 %vm2998_vm0, %v2999_v1 }
 0x32b   : > { %v835_v33 = vpop.trf.xlu0 }
 0x32c   : > { %2360 = vmatpush3.msra.mxu1 %v835_v33 }
 0x32d   : > { %2362 = vmatmul.mubr.msk.f32.vlgmr.msra.gmra.mrb[6].mxu1 %vm851_vm2, %v712_v30  ;;  %2369 = vmatprep.subr.mxu1 %v2999_v1 }
 0x32e   : > { %2371 = vmatprep.mubr.msk.f32.mxu1 %vm2998_vm0, %v2999_v1 }
 0x3ab   : > { %v920_v37 = vpop.f32.mrb[2].mxu1 }
 0x3ac   : > { %v1140_v38 = vmul.f32 0.35355338, %v920_v37  ;;  %v2348_v39 = vpop.f32.mrb[3].mxu1 }
 0x3ae   : > { %v1154_v40 = vsel %vm1151_vm3, %v1140_v38, -1e+30 }
 0x3af   : > { %v1158_v41 = vsel %vm851_vm2, %v1154_v40, -inf }
 0x3b0   : > { %1159 = vmax.xlane.f32.xlu0 %v1158_v41 }
 0x3f8   : > { %v992_v42 = vpop.f32.mrb[4].mxu1 }
 0x3f9   : > { %v1141_v43 = vmul.f32 0.35355338, %v992_v42  ;;  %v2353_v44 = vpop.f32.mrb[5].mxu1 }
 0x3fb   : > { %v1155_v45 = vsel %vm1151_vm3, %v1141_v43, -1e+30 }
 0x3fc   : > { %v1064_v46 = vpop.f32.mrb[2].mxu0  ;;  %v1161_v47 = vsel %vm851_vm2, %v1155_v45, -inf }
 0x3fd   : > { %v1142_v48 = vmul.f32 0.35355338, %v1064_v46  ;;  %1162 = vmax.xlane.f32.xlu1 %v1161_v47  ;;  %v2358_v49 = vpop.f32.mrb[3].mxu0  ;;  %v1928_v46 = vld [vmem:[#allocation13 + $0x8] sm:$0xff] }
 0x3fe   : > { %v3005_v49 = vmov 1934713408  }
 0x3ff   : > { %v1156_v50 = vsel %vm1151_vm3, %v1142_v48, -1e+30  ;;  %v3004_v48 = vmov 1983009808  }
 0x400   : > { %v1136_v51 = vpop.f32.mrb[6].mxu1  ;;  %v1164_v52 = vsel %vm851_vm2, %v1156_v50, -inf }
 0x401   : > { %v1143_v53 = vmul.f32 0.35355338, %v1136_v51  ;;  %v2363_v54 = vpop.f32.mrb[7].mxu1  ;;  %1165 = vmax.xlane.f32.xlu1 %v1164_v52 }
 0x403   : > { %v1157_v55 = vsel %vm1151_vm3, %v1143_v53, -1e+30 }
 0x404   : > { %v1167_v56 = vsel %vm851_vm2, %v1157_v55, -inf }
 0x405   : > { %1168 = vmax.xlane.f32.xlu0 %v1167_v56 }
 0x412   : > { %1202 = vrot.lane.b32.xlu1 %v3458_v18, %s3003_s10 }
 0x416   : > { %1206 = vrot.lane.b32.xlu1 %v718_v25, %s3003_s10 }
 0x41a   : > { %1208 = vrot.lane.b32.xlu1 %v721_v26, %s3003_s10 }
 0x41b   : > { %1204 = vrot.lane.b32.xlu0 %v715_v24, %s3003_s10 }
 0x43d   : > { %v1160_v57 = vpop.xlane.xlu0 %1159 }
 0x43e   : > { %v1170_v58 = vsub.f32 %v1154_v40, %v1160_v57 }
 0x440   : > { %v1174_v59 = vmul.f32 1.442695, %v1170_v58 }
 0x442   : > { %2575 = vpow2.f32 %v1174_v59 }
 0x44c   : > { %v2576_v60 = vpop.eup %2575 }
 0x44d   : > { %v1182_v61 = vsel %vm851_vm2, %v2576_v60, 0.0 }
 0x44e   : > { %1183 = vadd.xlane.f32.xlu0 %v1182_v61 }
 0x48a   : > { %v1163_v62 = vpop.xlane.xlu1 %1162 }
 0x48b   : > { %v1171_v63 = vsub.f32 %v1155_v45, %v1163_v62  ;;  %v1927_v45 = vld [vmem:[#allocation13] sm:$0xff] }
 0x48c   : > { %v2408_v47 = vpack.c.bf16 %v1928_v46, %v1927_v45 }
 0x48d   : > { %v1176_v2 = vmul.f32 1.442695, %v1171_v63 }
 0x48e   : > { %v1166_v3 = vpop.xlane.xlu1 %1165 }
 0x48f   : > { %2577 = vpow2.f32 %v1176_v2  ;;  %v1172_v4 = vsub.f32 %v1156_v50, %v1166_v3  ;;  %v1809_v50 = vunpack.c.l.s4 %v3005_v49 }
 0x491   : > { %v1178_v5 = vmul.f32 1.442695, %v1172_v4  ;;  %v1810_v54 = vunpack.c.0.s8 %v1809_v50 }
 0x492   : > { %v1169_v6 = vpop.xlane.xlu0 %1168  ;;  %v1203_v16 = vpop.permute.xlu1 %1202 }
 0x493   : > { %2579 = vpow2.f32 %v1178_v5  ;;  %v1173_v7 = vsub.f32 %v1157_v55, %v1169_v6  ;;  %v1813_v62 = vsub.s32 %v1810_v54, %v3480_v35 }
 0x495   : > { %v1180_v8 = vmul.f32 1.442695, %v1173_v7 }
 0x496   : > { %v1207_v17 = vpop.permute.xlu1 %1206  ;;  %v1205_v18 = vpop.permute.xlu0 %1204 }
 0x497   : > { %2581 = vpow2.f32 %v1180_v8  ;;  %v1929_v8 = vld [vmem:[#allocation13 + $0x10] sm:$0xff] }
 0x499   : > { %v2578_v9 = vpop.eup %2577 }
 0x49a   : > { %v1185_v10 = vsel %vm851_vm2, %v2578_v9, 0.0  ;;  %v1209_v19 = vpop.permute.xlu1 %1208 }
 0x49b   : > { %1186 = vadd.xlane.f32.xlu1 %v1185_v10 }
 0x49d   : > { %v2580_v11 = vpop.eup %2579 }
 0x49e   : > { %v1188_v12 = vsel %vm851_vm2, %v2580_v11, 0.0 }
 0x49f   : > { %1189 = vadd.xlane.f32.xlu0 %v1188_v12 }
 0x4a1   : > { %v2582_v13 = vpop.eup %2581 }
 0x4a2   : > { %v1191_v14 = vsel %vm851_vm2, %v2582_v13, 0.0 }
 0x4a3   : > { %1192 = vadd.xlane.f32.xlu0 %v1191_v14 }
 0x4ce   : > { %1214 = vxpose.xlu1.b32.start.end [1/1] (short) (narrow) %v1203_v16, 8 }
 0x4d0   : > { %1246 = vxpose.xlu0.b32.start.end [1/1] (short) (narrow) %v1205_v18, 8 }
 0x4d2   : > { %1310 = vxpose.xlu1.b32.start.end [1/1] (short) (narrow) %v1209_v19, 8 }
 0x4d4   : > { %1278 = vxpose.xlu0.b32.start.end [1/1] (short) (narrow) %v1207_v17, 8 }
 0x4db   : > { %v1184_v20 = vpop.xlane.xlu0 %1183 }
 0x4dc   : > { %2583 = vrcp.f32 %v1184_v20 }
 0x4e6   : > { %v2584_v21 = vpop.eup %2583 }
 0x4e7   : > { %v1198_v22 = vmul.f32 %v2584_v21, %v2576_v60 }
 0x4e9   : > { %2365 = vmatpush3.xpose.msk.msra.mxu0 %vm851_vm2, %v1198_v22 }
 0x4ea   : > { %2374 = vmatprep.subr.mxu0 %v2999_v1 }
 0x528   : > { %v1187_v23 = vpop.xlane.xlu1 %1186 }
 0x529   : > { %2585 = vrcp.f32 %v1187_v23 }
 0x52c   : > { %v1190_v26 = vpop.xlane.xlu0 %1189 }
 0x52d   : > { %2587 = vrcp.f32 %v1190_v26 }
 0x530   : > { %v1193_v27 = vpop.xlane.xlu0 %1192 }
 0x531   : > { %2589 = vrcp.f32 %v1193_v27 }
 0x533   : > { %v2586_v24 = vpop.eup %2585 }
 0x534   : > { %v1199_v25 = vmul.f32 %v2586_v24, %v2578_v9  ;;  %v1930_v9 = vld [vmem:[#allocation13 + $0x18] sm:$0xff] }
 0x535   : > { %v2411_v14 = vpack.c.bf16 %v1930_v9, %v1929_v8 }
 0x536   : > { %2370 = vmatpush3.xpose.msk.msra.mxu1 %vm851_vm2, %v1199_v25 }
 0x537   : > { %2379 = vmatprep.subr.mxu1 %v2999_v1  ;;  %v2588_v28 = vpop.eup %2587 }
 0x538   : > { %v1200_v30 = vmul.f32 %v2588_v28, %v2580_v11 }
 0x53b   : > { %v2590_v29 = vpop.eup %2589 }
 0x53c   : > { %v1201_v32 = vmul.f32 %v2590_v29, %v2582_v13 }
 0x54e   : > { %v1230_v31 = vpop.trf.xlu1 }
 0x54f   : > { %2367 = vmatmul.mubr.msk.f32.vlgmr.msra.gmra.mrb[4].mxu0 %vm851_vm2, %v1230_v31 }
 0x550   : > { %2375 = vmatpush3.xpose.msk.msra.mxu0 %vm851_vm2, %v1200_v30  ;;  %v1262_v33 = vpop.trf.xlu0  ;;  %2376 = vmatprep.mubr.msk.f32.mxu0 %vm2998_vm0, %v2999_v1 }
 0x551   : > { %2372 = vmatmul.mubr.msk.f32.vlgmr.msra.gmra.mrb[8].mxu1 %vm851_vm2, %v1262_v33  ;;  %2407 = vmatprep.subr.bf16.mxu0 %v2997_v0 }
 0x552   : > { %2380 = vmatpush3.xpose.msk.msra.mxu1 %vm851_vm2, %v1201_v32  ;;  %2381 = vmatprep.mubr.msk.f32.mxu1 %vm2998_vm0, %v2999_v1  ;;  %v1326_v34 = vpop.trf.xlu1 }
 0x554   : > { %v1294_v36 = vpop.trf.xlu0 }
 0x555   : > { %2377 = vmatmul.mubr.msk.f32.vlgmr.msra.gmra.mrb[6].mxu0 %vm851_vm2, %v1294_v36  ;;  %2382 = vmatmul.mubr.msk.f32.vlgmr.msra.gmra.mrb[10].mxu1 %vm851_vm2, %v1326_v34 }
 0x556   : > { %2392 = vmatprep.mubr.msk.f32.mxu0 %vm2998_vm0, %v2999_v1  ;;  %2409 = vmatpush3.bf16.msra.mxu0 %v2408_v47  ;;  %v1777_v1 = vunpack.c.l.s4 %v3004_v48 }
 0x557   : > { %2410 = vmatprep.subr.bf16.mxu0 %v2997_v0 }
 0x558   : > { %v1778_v52 = vunpack.c.0.s8 %v1777_v1 }
 0x55a   : > { %v1781_v55 = vsub.s32 %v1778_v52, %v3480_v35  ;;  %2412 = vmatpush3.bf16.msra.mxu0 %v2411_v14 }
 0x622   : > { %v1414_v37 = vpop.f32.mrb[4].mxu0 }
 0x623   : > { %1646 = vxpose.xlu0.b32.start.end [1/1] (short) (narrow) %v1414_v37, 8  ;;  %v2368_v38 = vpop.f32.mrb[5].mxu0 }
 0x624   : > { %v1490_v39 = vpop.f32.mrb[8].mxu1 }
 0x625   : > { %1678 = vxpose.xlu1.b32.start.end [1/1] (short) (narrow) %v1490_v39, 8  ;;  %v2373_v40 = vpop.f32.mrb[9].mxu1 }
 0x628   : > { %v1566_v41 = vpop.f32.mrb[6].mxu0  ;;  %v1642_v42 = vpop.f32.mrb[10].mxu1 }
 0x629   : > { %1742 = vxpose.xlu1.b32.start.end [1/1] (short) (narrow) %v1642_v42, 8  ;;  %1710 = vxpose.xlu0.b32.start.end [1/1] (short) (narrow) %v1566_v41, 8  ;;  %v2378_v43 = vpop.f32.mrb[7].mxu0  ;;  %v2383_v44 = vpop.f32.mrb[11].mxu1  ;;  %v2283_v42 = vld [vmem:[#allocation14] ss:$0 sm:$0xff] }
 0x6a3   : > { %v1662_v51 = vpop.trf.xlu0 }
 0x6a5   : > { %v1694_v53 = vpop.trf.xlu1 }
 0x6a9   : > { %v1758_v56 = vpop.trf.xlu1  ;;  %v1726_v57 = vpop.trf.xlu0 }
 0x6aa   : > { %v1790_v58 = vcombine.low %v1694_v53, %v1758_v56  ;;  %v1791_v59 = vcombine.high %v1694_v53, %v1758_v56  ;;  %v1774_v60 = vcombine.low %v1662_v51, %v1726_v57  ;;  %v1775_v61 = vcombine.high %v1662_v51, %v1726_v57  ;;  %v2286_v57 = vld [vmem:[#allocation17] ss:$0 sm:$0xff] }
 0x6ac   : > { %v1798_v63 = vrot.slane %v1790_v58, %v1781_v55  ;;  %v1805_v0 = vrot.slane %v1791_v59, %v1781_v55  ;;  %v1782_v2 = vrot.slane %v1774_v60, %v1781_v55  ;;  %v1789_v3 = vrot.slane %v1775_v61, %v1781_v55 }
 0x6ae   : > { %v1806_v4 = vcombine.low %v1782_v2, %v1798_v63  ;;  %v1807_v5 = vcombine.high %v1782_v2, %v1798_v63  ;;  %v1822_v6 = vcombine.low %v1789_v3, %v1805_v0  ;;  %v1823_v7 = vcombine.high %v1789_v3, %v1805_v0 }
 0x6b0   : > { %v1814_v10 = vrot.slane %v1806_v4, %v1813_v62  ;;  %v1821_v11 = vrot.slane %v1807_v5, %v1813_v62  ;;  %v1830_v12 = vrot.slane %v1822_v6, %v1813_v62  ;;  %v1837_v13 = vrot.slane %v1823_v7, %v1813_v62 }
 0x6b2   : > { %v1842_v16 = vcombine.low %v1814_v10, %v1821_v11  ;;  %v2281_v17 = vcombine.high %v1814_v10, %v1821_v11  ;;  %v1858_v18 = vcombine.low %v1830_v12, %v1837_v13  ;;  %v2282_v19 = vcombine.high %v1830_v12, %v1837_v13 }
 0x6b4   : > { %v1849_v35 = vrot.slane %v1842_v16, %v1781_v55  ;;  %v1857_v20 = vrot.slane %v2281_v17, %v1781_v55  ;;  %v1865_v21 = vrot.slane %v1858_v18, %v1781_v55  ;;  %v1873_v22 = vrot.slane %v2282_v19, %v1781_v55 }
 0x6b6   : > { %v1875_v23 = vcombine.high %v1849_v35, %v1857_v20  ;;  %v1891_v24 = vcombine.high %v1865_v21, %v1873_v22  ;;  %v1874_v25 = vcombine.low %v1849_v35, %v1857_v20  ;;  %v1890_v26 = vcombine.low %v1865_v21, %v1873_v22 }
 0x6b8   : > { %v1889_v27 = vrot.slane %v1875_v23, %v1813_v62  ;;  %v1905_v28 = vrot.slane %v1891_v24, %v1813_v62  ;;  %v1882_v29 = vrot.slane %v1874_v25, %v1813_v62  ;;  %v1898_v30 = vrot.slane %v1890_v26, %v1813_v62 }
 0x6ba   : > { %v1908_v31 = vcombine.low %v1889_v27, %v1905_v28  ;;  %v1907_v32 = vcombine.high %v1882_v29, %v1898_v30  ;;  %v1906_v33 = vcombine.low %v1882_v29, %v1898_v30  ;;  %v1909_v34 = vcombine.high %v1889_v27, %v1905_v28 }
 0x6bc   : > { %1915 = vrot.lane.b32.xlu1 %v1908_v31, %s3006_s23  ;;  %1911 = vrot.lane.b32.xlu0 %v1907_v32, %s3007_s6 }
 0x6c0   : > { %1919 = vrot.lane.b32.xlu1 %v1909_v34, %s3008_s3 }
 0x72e   : > { %v1916_v36 = vpop.permute.xlu1 %1915  ;;  %v1912_v37 = vpop.permute.xlu0 %1911 }
 0x72f   : > { %v1922_v38 = vsel %vm851_vm2, %v1906_v33, %v1912_v37 }
 0x730   : > { %v1924_v40 = vsel %vm1923_vm4, %v1922_v38, %v1916_v36 }
 0x732   : > { %v1920_v39 = vpop.permute.xlu1 %1919 }
 0x733   : > { %v1926_v41 = vsel %vm1925_vm5, %v1924_v40, %v1920_v39 }
 0x734   : > { %2393 = vmatmul.mubr.msk.f32.vlgmr.msra.gmra.mrb[8].mxu0 %vm548_vm1, %v1926_v41 }
 0x807   : > { %v2007_v43 = vpop.f32.mrb[8].mxu0 }
 0x808   : > { %v2008_v44 = vadd.f32 %v2283_v42, %v2007_v43  ;;  %v2394_v45 = vpop.f32.mrb[9].mxu0 }
 0x80a   : > { %v2011_v46 = vadd.f32 %v2008_v44, %v3448_v15  ;;  %v2285_v15 = vld [vmem:[#allocation16] ss:$0 sm:$0xff] }
 0x80c   : > { %v2012_v47 = vsel %vm548_vm1, %v2011_v46, 0.0 }
 0x80d   : > { %2013 = vadd.xlane.f32.xlu1 %v2012_v47 }
 0x89a   : > { %v2014_v48 = vpop.xlane.xlu1 %2013 }
 0x89b   : > { %v2016_v1 = vmul.f32 0.03125, %v2014_v48 }
 0x89d   : > { %v2017_v49 = vsub.f32 %v2011_v46, %v2016_v1 }
 0x89f   : > { %v2018_v50 = vmul.f32 %v2017_v49, %v2017_v49 }
 0x8a1   : > { %v2019_v51 = vsel %vm548_vm1, %v2018_v50, 0.0 }
 0x8a2   : > { %2020 = vadd.xlane.f32.xlu0 %v2019_v51 }
 0x92f   : > { %v2021_v52 = vpop.xlane.xlu0 %2020 }
 0x930   : > { %v2022_v53 = vmul.f32 0.03125, %v2021_v52 }
 0x932   : > { %v2023_v54 = vadd.f32 1e-05, %v2022_v53 }
 0x934   : > { %2591 = vrsqrt.f32 %v2023_v54 }
 0x93e   : > { %v2592_v55 = vpop.eup %2591 }
 0x93f   : > { %v2025_v56 = vmul.f32 %v2592_v55, %v2017_v49 }
 0x941   : > { %v2033_v58 = vmul.f32 %v2285_v15, %v2025_v56 }
 0x943   : > { %v2041_v59 = vadd.f32 %v2286_v57, %v2033_v58 }
 0x945   : > { %2042 = vst.msk [vmem:[%s534_s30] sm:$0xff] %vm548_vm1, %v2041_v59 }
 0x946   : > { %2890 = shalt.err (!%p2887_p8)
}
 0x947   : > { %s2891_s5 = scalar_lea.hbm %s3530_s28, 128  ;;  %s2895_s6 = scalar_lea.hbm %s3641_s21, 256 }
 0x948   : > { %p2892_p3 = scmp.ne.s32.totalorder %s3530_s28, %s2891_s5  ;;  %p2896_p13 = scmp.lt.u32.totalorder %s3530_s28, %s3641_s21 }
 0x949   : > { %p2897_p4 = scmp.lt.u32.totalorder %s2895_s6, %s2891_s5  ;;  %p2899_p0 = scmp.lt.u32.totalorder %s2891_s5, %s3530_s28 }
 0x94a   : > { %p2893_p12 = pnand %p2892_p3, %p3642_p7 }
 0x94b   : > { %p2898_p9 = por %p2897_p4, %p2896_p13 }
 0x94c   : > { %p2894_p6 = pneg %p2893_p12 }
 0x94d   : > { %p2900_p11 = por %p2899_p0, %p2898_p9 }
 0x94f   : > { %p2901_p2 = pnand %p2900_p11, %p2894_p6 }
 0x951   : > { %2904 = shalt.err (!%p2901_p2)
}
 0x952   : > { %2449 = dma.vmem_to_hbm [thread:$0]  (%p3642_p7), %s3532_s4, 128, %s3530_s28, %s2044_s7  }
 0x953 PF: > { %s2070_s27 = sand.u32 1, %s2963_s13   ;;  %p3643_p10 = scmp.ne.s32.totalorder %s3624_s26, 0 }
 0x954   : > { %p3644_p1 = scmp.ge.s32.totalorder %s2983_s18, 2  ;;  %s2071_s30 = scalar_lea.sflag [#allocation4], %s2070_s27 }
 0x956   : > { %p2484_p5 = pnand %p3644_p1, %p3643_p10 }
 0x958   : > { %2958 = dma.done.wait (!%p2484_p5), %s2071_s30, 128  }
 0x959   : > { %2960 = vsyncadd (!%p2484_p5), %s2071_s30, 4294967168  ;;  %s33_s18 = sadd.s32 1, %s2983_s18   ;;  %s3645_s13 = smov %s2967_s14 }
 0x95a   : > { %p30_p8 = scmp.ge.s32.totalorder %s33_s18, 4   ;;  %s3646_s14 = smov %s2971_s15 }
 0x95b   : > { %s3647_s15 = smov %s3319_s12  ;;  %s3648_s16 = smov %s2979_s17 }
 0x95c   : > { %s3649_s17 = smov %s3651_s11  ;;  %32 = sbr.rel (!%p30_p8) target bundleno = 21 (0x15), region = 150 }
 0x963   :  { %2076 = vsyncpa [#allocation3], 1 }
 0x964   :  { %2078 = vsyncpa [#allocation3 + $0x1], 1 }
 0x965   :  { %2079 = vsyncpa [#allocation6], 1 }
 0x966   :  { %2081 = vsyncpa [#allocation6 + $0x1], 1 }
 0x967   :  { %2082 = vsyncpa [#allocation9], 1 }
 0x968   :  { %2083 = vsyncpa [#allocation12], 1 }
 0x969   :  { %2084 = vsyncpa [#allocation15], 1 }
 0x96a   :  { %2085 = vsyncpa [#allocation18], 1 }
 0x96b   :  { %2086 = vsyncpa [#allocation4], 1 }
 0x96c   :  { %2088 = vsyncpa [#allocation4 + $0x1], 1 }

</bundles_post_ra>
